<compile_context>
chip_gen: v5e
topology: v5e:2x2
jax: 0.10.0
libtpu: 0.0.40
codegen_flags: <defaults>
</compile_context>

<pallas_src>
import jax
import jax.numpy as jnp
from jax.experimental import pallas as pl
from jax.experimental.pallas import tpu as pltpu


def _policy_net_kernel(xT_ref, w1b1_ref, w2d_ref, b2d_ref, out_ref):
    S = xT_ref.shape[0]
    w1b1 = w1b1_ref[...]                                   # [H, S+1] (VMEM-resident)

    # fc1 + ReLU, transposed: [H, S] @ [S, tb] -> [H, tb] on the MXU.
    hT = jnp.dot(w1b1[:, :S], xT_ref[...], preferred_element_type=jnp.float32)
    hT = jnp.maximum(hT + w1b1[:, S:S + 1], 0.0)

    # fc2 + softmax specialized to 2 actions, as a logit difference (MXU again):
    #   d = (w2[0]-w2[1]) @ hT + (b2[0]-b2[1])   -> [1, tb], lane-dense.
    d = jnp.dot(w2d_ref[...], hT, preferred_element_type=jnp.float32)
    d = d + b2d_ref[0]                                      # scalar from SMEM

    # softmax over 2 logits == sigmoid(d); sign-split form avoids exp overflow.
    e = jnp.exp(-jnp.abs(d))
    p0 = jnp.where(d >= 0.0, 1.0 / (1.0 + e), e / (1.0 + e))

    out_ref[0:1, :] = p0.astype(out_ref.dtype)               # two dense sublane rows
    out_ref[1:2, :] = (1.0 - p0).astype(out_ref.dtype)


def prepare_params(w1, b1, w2, b2):
    """Fold PyTorch-layout params into kernel operands. Call once per param update.

    w1: [hidden, state]  (fc1.weight, PyTorch [out, in] layout)
    b1: [hidden]
    w2: [action, hidden] (fc2.weight)
    b2: [action]         (action dim must be 2: CartPole)
    """
    assert w2.shape[0] == 2 and b2.shape[0] == 2, \
        "kernel specializes softmax(2) as a sigmoid; CartPole has 2 actions"
    f32 = jnp.float32
    H = w1.shape[0]
    w1b1 = jnp.concatenate([w1.astype(f32), b1.astype(f32).reshape(H, 1)], axis=1)  # [H, S+1]
    w2d = (w2[0] - w2[1]).astype(f32).reshape(1, H)                                  # [1, H]
    b2d = (b2[0] - b2[1]).astype(f32).reshape(1)                                     # [1] -> SMEM
    return w1b1, w2d, b2d


def policy_net_forward(x, w1b1, w2d, b2d, *, block_b=2048):
    """PolicyNet forward -> softmax action probabilities, shape [B, 2].

    x: [B, state_dim]; (w1b1, w2d, b2d) from prepare_params().
    block_b: batch-tile width in lanes. Any B <= block_b runs as one grid step
             (best on v5e/v6e); lower it (multiple of 128) for very large B on
             v7x so >= 2 tiles exist and both TensorCores get work.
    """
    B, S = x.shape
    H = w1b1.shape[0]

    xT = x.astype(jnp.float32).T                              # [S, B] lane-dense stream

    if B <= block_b:
        tb = B                                                # single fat tile
    else:
        tb = max(128, (block_b // 128) * 128)                 # 128-lane aligned tiles
    n_tiles = pl.cdiv(B, tb)

    outT = pl.pallas_call(
        _policy_net_kernel,
        out_shape=jax.ShapeDtypeStruct((2, B), jnp.float32),
        grid=(n_tiles,),
        in_specs=[
            pl.BlockSpec((S, tb), lambda i: (0, i)),          # x^T tiles stream
            pl.BlockSpec((H, S + 1), lambda i: (0, 0)),       # W1 (+ b1 column), resident
            pl.BlockSpec((1, H), lambda i: (0, 0)),           # w2 logit-diff row, resident
            pl.BlockSpec(memory_space=pltpu.MemorySpace.SMEM),  # b2 logit-diff scalar
        ],
        out_specs=pl.BlockSpec((2, tb), lambda i: (0, i)),    # [2, B] lane-dense output
        compiler_params=pltpu.CompilerParams(
            dimension_semantics=("parallel",),                # v7x: shard tiles over 2 TCs
        ),
    )(xT, w1b1, w2d, b2d)

    return outT.T                                             # [B, 2]


if __name__ == "__main__":
    # CartPole-v1: state_dim=4, action_dim=2, hidden_dim=128 (as in the module).
    state_dim, hidden_dim, action_dim = 4, 128, 2

    key = jax.random.PRNGKey(0)
    k_x, k_w1, k_b1, k_w2, k_b2 = jax.random.split(key, 5)

    # Deterministic params, PyTorch Linear default init, PyTorch [out, in] layout.
    bound1 = 1.0 / jnp.sqrt(jnp.float32(state_dim))
    bound2 = 1.0 / jnp.sqrt(jnp.float32(hidden_dim))
    w1 = jax.random.uniform(k_w1, (hidden_dim, state_dim), jnp.float32, -bound1, bound1)
    b1 = jax.random.uniform(k_b1, (hidden_dim,), jnp.float32, -bound1, bound1)
    w2 = jax.random.uniform(k_w2, (action_dim, hidden_dim), jnp.float32, -bound2, bound2)
    b2 = jax.random.uniform(k_b2, (action_dim,), jnp.float32, -bound2, bound2)

    def reference(xv):
        h = jnp.maximum(xv @ w1.T + b1, 0.0)
        return jax.nn.softmax(h @ w2.T + b2, axis=1)

    # Fold parameters once (per parameter update), not per forward call.
    w1b1, w2d, b2d = prepare_params(w1, b1, w2, b2)

    # Small batch that fills the 8 sublanes of a vreg.
    x8 = jax.random.normal(k_x, (8, state_dim), jnp.float32)
    out8 = jax.block_until_ready(policy_net_forward(x8, w1b1, w2d, b2d))
    assert out8.shape == (8, action_dim)
    assert jnp.allclose(out8, reference(x8), atol=1e-5, rtol=1e-5)
    assert jnp.allclose(jnp.sum(out8, axis=1), 1.0, atol=1e-5)

    # Tiny batch (B=2): single tile with tb == B (no host-side padding needed).
    x2 = x8[:2]
    out2 = jax.block_until_ready(policy_net_forward(x2, w1b1, w2d, b2d))
    assert out2.shape == (2, action_dim)
    assert jnp.allclose(out2, reference(x2), atol=1e-5, rtol=1e-5)

    # Larger batch with a forced small tile: exercises multi-tile streaming and
    # the Pallas-handled partial last tile (200 = 128 + 72).
    xbig = jax.random.normal(jax.random.PRNGKey(1), (200, state_dim), jnp.float32)
    outbig = jax.block_until_ready(policy_net_forward(xbig, w1b1, w2d, b2d, block_b=128))
    assert outbig.shape == (200, action_dim)
    assert jnp.allclose(outbig, reference(xbig), atol=1e-5, rtol=1e-5)

    print("KERNEL_OK")
</pallas_src>

<mosaic_0001>
module attributes {stable_mosaic.version = 11 : i64} {
  func.func @_policy_net_kernel(%arg0: i32, %arg1: memref<4x8xf32, #tpu.memory_space<vmem>>, %arg2: memref<128x5xf32, #tpu.memory_space<vmem>>, %arg3: memref<1x128xf32, #tpu.memory_space<vmem>>, %arg4: memref<1xf32, #tpu.memory_space<smem>>, %arg5: memref<2x8xf32, #tpu.memory_space<vmem>>) attributes {dimension_semantics = [#tpu.dimension_semantics<parallel>], iteration_bounds = array<i64: 1>, scalar_prefetch = 0 : i64, scratch_operands = 0 : i64, tpu.core_type = #tpu.core_type<tc>, window_params = [{transform_indices = @transform_0, window_bounds = array<i64: 4, 8>}, {pipeline_mode = #tpu.pipeline_mode<synchronous>, transform_indices = @transform_1, window_bounds = array<i64: 128, 5>}, {pipeline_mode = #tpu.pipeline_mode<synchronous>, transform_indices = @transform_2, window_bounds = array<i64: 1, 128>}, {transform_indices = @transform_3, window_bounds = array<i64: 1>}, {transform_indices = @transform_4, window_bounds = array<i64: 2, 8>}]} {
    %c0 = arith.constant 0 : index
    %c0_0 = arith.constant 0 : index
    %0 = vector.load %arg2[%c0, %c0_0] : memref<128x5xf32, #tpu.memory_space<vmem>>, vector<128x5xf32>
    %1 = vector.extract_strided_slice %0 {offsets = [0, 0], sizes = [128, 4], strides = [1, 1]} : vector<128x5xf32> to vector<128x4xf32>
    %c0_1 = arith.constant 0 : index
    %c0_2 = arith.constant 0 : index
    %2 = vector.load %arg1[%c0_1, %c0_2] : memref<4x8xf32, #tpu.memory_space<vmem>>, vector<4x8xf32>
    %cst = arith.constant dense<0.000000e+00> : vector<128x8xf32>
    %3 = tpu.matmul %1, %2, %cst {dimension_numbers = #tpu.dot_dimension_numbers<[1], [0], [0], [1], [0, 0, 1, 1], [], []>} : vector<128x4xf32>, vector<4x8xf32>, vector<128x8xf32> -> vector<128x8xf32>
    %4 = vector.extract_strided_slice %0 {offsets = [0, 4], sizes = [128, 1], strides = [1, 1]} : vector<128x5xf32> to vector<128x1xf32>
    %5 = vector.broadcast %4 : vector<128x1xf32> to vector<128x8xf32>
    %6 = arith.addf %3, %5 : vector<128x8xf32>
    %cst_3 = arith.constant 0.000000e+00 : f32
    %7 = vector.broadcast %cst_3 : f32 to vector<128x8xf32>
    %8 = arith.maximumf %6, %7 : vector<128x8xf32>
    %c0_4 = arith.constant 0 : index
    %c0_5 = arith.constant 0 : index
    %9 = vector.load %arg3[%c0_4, %c0_5] : memref<1x128xf32, #tpu.memory_space<vmem>>, vector<1x128xf32>
    %cst_6 = arith.constant dense<0.000000e+00> : vector<1x8xf32>
    %10 = tpu.matmul %9, %8, %cst_6 {dimension_numbers = #tpu.dot_dimension_numbers<[1], [0], [0], [1], [0, 0, 1, 1], [], []>} : vector<1x128xf32>, vector<128x8xf32>, vector<1x8xf32> -> vector<1x8xf32>
    %c0_7 = arith.constant 0 : index
    %11 = memref.load %arg4[%c0_7] : memref<1xf32, #tpu.memory_space<smem>>
    %12 = vector.broadcast %11 : f32 to vector<1x8xf32>
    %13 = arith.addf %10, %12 : vector<1x8xf32>
    %14 = math.absf %13 : vector<1x8xf32>
    %cst_8 = arith.constant 0.000000e+00 : f32
    %15 = vector.broadcast %cst_8 : f32 to vector<1x8xf32>
    %16 = arith.subf %15, %14 : vector<1x8xf32>
    %17 = math.exp %16 : vector<1x8xf32>
    %cst_9 = arith.constant 0.000000e+00 : f32
    %18 = vector.broadcast %cst_9 : f32 to vector<1x8xf32>
    %19 = arith.cmpf oge, %13, %18 : vector<1x8xf32>
    %cst_10 = arith.constant 1.000000e+00 : f32
    %20 = vector.broadcast %cst_10 : f32 to vector<1x8xf32>
    %21 = arith.addf %20, %17 : vector<1x8xf32>
    %cst_11 = arith.constant 1.000000e+00 : f32
    %22 = vector.broadcast %cst_11 : f32 to vector<1x8xf32>
    %23 = arith.divf %22, %21 : vector<1x8xf32>
    %cst_12 = arith.constant 1.000000e+00 : f32
    %24 = vector.broadcast %cst_12 : f32 to vector<1x8xf32>
    %25 = arith.addf %24, %17 : vector<1x8xf32>
    %26 = arith.divf %17, %25 : vector<1x8xf32>
    %27 = arith.select %19, %23, %26 : vector<1x8xi1>, vector<1x8xf32>
    %c0_13 = arith.constant 0 : index
    %c0_14 = arith.constant 0 : index
    %28 = vector.load %arg5[%c0_13, %c0_14] : memref<2x8xf32, #tpu.memory_space<vmem>>, vector<1x8xf32>
    tpu.vector_store %arg5[%c0_13, %c0_14], %27 {strides = array<i32>} : memref<2x8xf32, #tpu.memory_space<vmem>>, vector<1x8xf32>,
    %cst_15 = arith.constant 1.000000e+00 : f32
    %29 = vector.broadcast %cst_15 : f32 to vector<1x8xf32>
    %30 = arith.subf %29, %27 : vector<1x8xf32>
    %c1 = arith.constant 1 : index
    %c0_16 = arith.constant 0 : index
    %31 = vector.load %arg5[%c1, %c0_16] : memref<2x8xf32, #tpu.memory_space<vmem>>, vector<1x8xf32>
    tpu.vector_store %arg5[%c1, %c0_16], %30 {strides = array<i32>} : memref<2x8xf32, #tpu.memory_space<vmem>>, vector<1x8xf32>,
    return
  }
  func.func @transform_0(%arg0: i32) -> (i32, i32) {
    %c0_i32 = arith.constant 0 : i32
    %c0_i32_0 = arith.constant 0 : i32
    return %c0_i32, %arg0 : i32, i32
  }
  func.func @transform_1(%arg0: i32) -> (i32, i32) {
    %c0_i32 = arith.constant 0 : i32
    %c0_i32_0 = arith.constant 0 : i32
    %c0_i32_1 = arith.constant 0 : i32
    return %c0_i32, %c0_i32_0 : i32, i32
  }
  func.func @transform_2(%arg0: i32) -> (i32, i32) {
    %c0_i32 = arith.constant 0 : i32
    %c0_i32_0 = arith.constant 0 : i32
    %c0_i32_1 = arith.constant 0 : i32
    return %c0_i32, %c0_i32_0 : i32, i32
  }
  func.func @transform_3(%arg0: i32) -> i32 {
    %c0_i32 = arith.constant 0 : i32
    %c0_i32_0 = arith.constant 0 : i32
    return %c0_i32 : i32
  }
  func.func @transform_4(%arg0: i32) -> (i32, i32) {
    %c0_i32 = arith.constant 0 : i32
    %c0_i32_0 = arith.constant 0 : i32
    return %c0_i32, %arg0 : i32, i32
  }
}

</mosaic_0001>

<bundles_post_ra>
// kernel: tpu_custom_call.1
= control target key start
LH: loop header
LB: loop body
LE: loop exit
PB: predicated region body
PF: predicated region fallthrough
CT: control target
= control target key end

     0   :  { %vm149_vm0 = vcmask 1043456   ;;  %v354_v3 = vmov 4   ;;  %vm116_vm1 = vcmask 31744   ;;  %s463_s0 = inlined_call_operand.vmem [shape: f32[4,8], index: 0, kind: input, shape index: {}]   ;;  %s464_s1 = inlined_call_operand.vmem [shape: f32[128,5], index: 1, kind: input, shape index: {}]   ;;  %s465_s2 = inlined_call_operand.vmem [shape: f32[1,128], index: 2, kind: input, shape index: {}]   ;;  %s466_s3 = inlined_call_operand.<no memory space> [shape: f32[1], index: 3, kind: input, shape index: {}]   ;;  %s467_s4 = inlined_call_operand.hbm [shape: f32[2,8], index: 4, kind: output, shape index: {}]  }
   0x1   :  { %v35_v0 = vld [vmem:[%s463_s0] sm:$0xf]  ;;  %v34_v1 = vld [vmem:[%s464_s1 + $0x78] sm:$0xff]  ;;  %321 = vset.pattern.permute.xlu0 %v354_v3  ;;  %v25_v4 = vld [vmem:[%s464_s1 + $0x30] sm:$0xff]  ;;  %322 = vset.pattern.permute.xlu1 %v354_v3 }
   0x2   :  { %v19_v2 = vld [vmem:[%s464_s1] sm:$0xff]  ;;  %300 = vmatpush.msk.msra.mxu0 %vm149_vm0, %v35_v0  ;;  %317 = vmatpush.msk.msra.mxu2 %vm149_vm0, %v35_v0  ;;  %v30_v6 = vld [vmem:[%s464_s1 + $0x58] sm:$0xff]  ;;  %v32_v7 = vld [vmem:[%s464_s1 + $0x68] sm:$0xff] }
   0x3   :  { %v31_v5 = vld [vmem:[%s464_s1 + $0x60] sm:$0xff]  ;;  %318 = vmatpush.msk.msra.mxu3 %vm149_vm0, %v35_v0  ;;  %113 = vperm.xlu0 %321, %v34_v1  }
   0x4   :  { %301 = vmatmul.msk.f32.vlgmr.msra.gmra.mxu0 %vm116_vm1, %v19_v2  ;;  %307 = vmatmul.msk.f32.vlgmr.msra.gmra.mxu2 %vm116_vm1, %v25_v4 }
   0x5   :  { %313 = vmatmul.msk.f32.vlgmr.msra.gmra.mxu3 %vm116_vm1, %v31_v5  ;;  %323 = vset.pattern.permute.xlu2 %v354_v3 }
   0x6   :  { %10 = vsyncpa [#allocation4], 0  ;;  %103 = vperm.xlu1 %322, %v32_v7   ;;  %93 = vperm.xlu2 %323, %v30_v6   ;;  %v33_v8 = vld [vmem:[%s464_s1 + $0x70] sm:$0xff]  ;;  %v20_v9 = vld [vmem:[%s464_s1 + $0x8] sm:$0xff]  ;;  %vm280_vm6 = vcmask 57344   ;;  %s291_s26 = sshll.u32 %s467_s4, 4  ;;  %s292_s26 = int_to_ptr.hbm [resolvable:$true] %s291_s26 }
   0x7   :  { %v26_v10 = vld [vmem:[%s464_s1 + $0x38] sm:$0xff]  ;;  %v29_v11 = vld [vmem:[%s464_s1 + $0x50] sm:$0xff]  ;;  %v28_v12 = vld [vmem:[%s464_s1 + $0x48] sm:$0xff] }
   0x8   :  { %v21_v13 = vld [vmem:[%s464_s1 + $0x10] sm:$0xff]  ;;  %v27_v14 = vld [vmem:[%s464_s1 + $0x40] sm:$0xff]  ;;  %v22_v15 = vld [vmem:[%s464_s1 + $0x18] sm:$0xff] }
   0x9   :  { %v24_v16 = vld [vmem:[%s464_s1 + $0x28] sm:$0xff]  ;;  %v23_v17 = vld [vmem:[%s464_s1 + $0x20] sm:$0xff] }
   0xb   :  { %108 = vperm.xlu0 %321, %v33_v8  }
   0xc   :  { %302 = vmatmul.msk.f32.gmra.mxu0 %vm116_vm1, %v20_v9  ;;  %308 = vmatmul.msk.f32.gmra.mxu2 %vm116_vm1, %v26_v10 }
   0xd   :  { %314 = vmatmul.msk.f32.gmra.mxu3 %vm116_vm1, %v32_v7 }
   0xe   :  { %98 = vperm.xlu1 %322, %v31_v5   ;;  %88 = vperm.xlu2 %323, %v29_v11  }
  0x13   :  { %83 = vperm.xlu0 %321, %v28_v12  }
  0x14   :  { %303 = vmatmul.msk.f32.gmra.mxu0 %vm116_vm1, %v21_v13  ;;  %309 = vmatmul.msk.f32.gmra.mxu2 %vm116_vm1, %v27_v14 }
  0x15   :  { %315 = vmatmul.msk.f32.gmra.mxu3 %vm116_vm1, %v33_v8 }
  0x16   :  { %78 = vperm.xlu1 %322, %v27_v14   ;;  %73 = vperm.xlu2 %323, %v26_v10  }
  0x1b   :  { %68 = vperm.xlu0 %321, %v25_v4  }
  0x1c   :  { %304 = vmatmul.msk.f32.gmra.mxu0 %vm116_vm1, %v22_v15  ;;  %310 = vmatmul.msk.f32.gmra.mxu2 %vm116_vm1, %v28_v12 }
  0x1d   :  { %316 = vmatmul.msk.f32.gmra.mxu3 %vm116_vm1, %v34_v1 }
  0x1e   :  { %63 = vperm.xlu1 %322, %v24_v16   ;;  %58 = vperm.xlu2 %323, %v23_v17  }
  0x23   :  { %53 = vperm.xlu0 %321, %v22_v15  }
  0x24   :  { %305 = vmatmul.msk.f32.gmra.mxu0 %vm116_vm1, %v23_v17  ;;  %311 = vmatmul.msk.f32.gmra.mxu2 %vm116_vm1, %v29_v11 }
  0x26   :  { %48 = vperm.xlu1 %322, %v21_v13   ;;  %43 = vperm.xlu2 %323, %v20_v9  }
  0x2b   :  { %38 = vperm.xlu0 %321, %v19_v2  }
  0x2c   :  { %306 = vmatmul.msk.f32.gmra.mxu0 %vm116_vm1, %v24_v16  ;;  %312 = vmatmul.msk.f32.gmra.mxu2 %vm116_vm1, %v30_v6 }
  0x60   :  { %v94_v26 = vpop.permute.xlu2 %93 }
  0x68   :  { %v89_v36 = vpop.permute.xlu2 %88 }
  0x70   :  { %v74_v47 = vpop.permute.xlu2 %73 }
  0x75   :  { %v114_v21 = vpop.permute.xlu0 %113 }
  0x78   :  { %v104_v25 = vpop.permute.xlu1 %103  ;;  %v59_v58 = vpop.permute.xlu2 %58 }
  0x7d   :  { %v109_v29 = vpop.permute.xlu0 %108 }
  0x80   :  { %v99_v31 = vpop.permute.xlu1 %98  ;;  %v44_v8 = vpop.permute.xlu2 %43 }
  0x81   :  { %v448_v18 = vpop.f32.mrf.mxu0 }
  0x85   :  { %v84_v39 = vpop.permute.xlu0 %83 }
  0x87   :  { %v188_v19 = vpop.f32.mrf.mxu2 }
  0x88   :  { %v206_v20 = vpop.f32.mrf.mxu3  ;;  %v79_v46 = vpop.permute.xlu1 %78 }
  0x89   :  { %v450_v22 = vpop.f32.mrf.mxu0  ;;  %v207_v41 = vadd.f32 %v206_v20, %v99_v31  ;;  %v236_v20 = vstv %s466_s3 }
  0x8a   :  { %v174_v13 = vadd.f32 %v450_v22, %v44_v8 }
  0x8b   :  { %v230_v45 = vmax.f32 %v207_v41, 0.0 }
  0x8c   :  { %v219_v16 = vmax.f32 %v174_v13, 0.0 }
  0x8d   :  { %v69_v48 = vpop.permute.xlu0 %68 }
  0x8e   :  { %v189_v63 = vadd.f32 %v188_v19, %v69_v48  ;;  %v234_v19 = vld [vmem:[%s465_s2] sm:$0x1]  ;;  %s355_s2 = smov [#allocation3]  }
  0x8f   :  { %v191_v23 = vpop.f32.mrf.mxu2  ;;  %s289_s3 = sshll.u32 %s355_s2, 4  ;;  %s290_s3 = int_to_ptr.vmem [resolvable:$true] %s289_s3 }
  0x90   :  { %v209_v24 = vpop.f32.mrf.mxu3  ;;  %v64_v55 = vpop.permute.xlu1 %63  ;;  %v192_v59 = vadd.f32 %v191_v23, %v74_v47  ;;  %v224_v3 = vmax.f32 %v189_v63, 0.0 }
  0x91   :  { %v176_v30 = vpop.f32.mrf.mxu0  ;;  %v210_v37 = vadd.f32 %v209_v24, %v104_v25 }
  0x92   :  { %v225_v1 = vmax.f32 %v192_v59, 0.0 }
  0x93   :  { %v231_v43 = vmax.f32 %v210_v37, 0.0 }
  0x95   :  { %v54_v61 = vpop.permute.xlu0 %53 }
  0x97   :  { %v194_v27 = vpop.f32.mrf.mxu2 }
  0x98   :  { %v212_v28 = vpop.f32.mrf.mxu3  ;;  %v195_v56 = vadd.f32 %v194_v27, %v79_v46  ;;  %v49_v5 = vpop.permute.xlu1 %48 }
  0x99   :  { %v213_v34 = vadd.f32 %v212_v28, %v109_v29  ;;  %v179_v40 = vpop.f32.mrf.mxu0  ;;  %v177_v9 = vadd.f32 %v176_v30, %v49_v5 }
  0x9a   :  { %v226_v0 = vmax.f32 %v195_v56, 0.0  ;;  %v180_v6 = vadd.f32 %v179_v40, %v54_v61 }
  0x9b   :  { %v232_v42 = vmax.f32 %v213_v34, 0.0  ;;  %v220_v15 = vmax.f32 %v177_v9, 0.0 }
  0x9c   :  { %v221_v12 = vmax.f32 %v180_v6, 0.0 }
  0x9d   :  { %v39_v11 = vpop.permute.xlu0 %38 }
  0x9e   :  { %v171_v14 = vadd.f32 %v448_v18, %v39_v11 }
  0x9f   :  { %v197_v32 = vpop.f32.mrf.mxu2 }
  0xa0   :  { %v215_v33 = vpop.f32.mrf.mxu3  ;;  %v198_v53 = vadd.f32 %v197_v32, %v84_v39  ;;  %v218_v17 = vmax.f32 %v171_v14, 0.0 }
  0xa1   :  { %v216_v35 = vadd.f32 %v215_v33, %v114_v21  ;;  %v182_v49 = vpop.f32.mrf.mxu0 }
  0xa2   :  { %v227_v60 = vmax.f32 %v198_v53, 0.0  ;;  %v183_v4 = vadd.f32 %v182_v49, %v59_v58 }
  0xa3   :  { %v233_v38 = vmax.f32 %v216_v35, 0.0 }
  0xa4   :  { %v222_v10 = vmax.f32 %v183_v4, 0.0 }
  0xa5   :  { %237 = vmatpush.msra.mxu1 %v233_v38 }
  0xa7   :  { %238 = vmatpush.msra.mxu1 %v232_v42  ;;  %v200_v44 = vpop.f32.mrf.mxu2 }
  0xa8   :  { %v201_v51 = vadd.f32 %v200_v44, %v89_v36 }
  0xa9   :  { %239 = vmatpush.msra.mxu1 %v231_v43  ;;  %v185_v62 = vpop.f32.mrf.mxu0 }
  0xaa   :  { %v228_v57 = vmax.f32 %v201_v51, 0.0  ;;  %v186_v2 = vadd.f32 %v185_v62, %v64_v55 }
  0xab   :  { %240 = vmatpush.msra.mxu1 %v230_v45 }
  0xac   :  { %v223_v7 = vmax.f32 %v186_v2, 0.0 }
  0xaf   :  { %v203_v50 = vpop.f32.mrf.mxu2 }
  0xb0   :  { %v204_v52 = vadd.f32 %v203_v50, %v94_v26 }
  0xb2   :  { %v229_v54 = vmax.f32 %v204_v52, 0.0 }
  0xb4   :  { %241 = vmatpush.msra.mxu1 %v229_v54 }
  0xb6   :  { %242 = vmatpush.msra.mxu1 %v228_v57 }
  0xb8   :  { %243 = vmatpush.msra.mxu1 %v227_v60 }
  0xba   :  { %244 = vmatpush.msra.mxu1 %v226_v0 }
  0xbc   :  { %245 = vmatpush.msra.mxu1 %v225_v1 }
  0xbe   :  { %246 = vmatpush.msra.mxu1 %v224_v3 }
  0xc0   :  { %247 = vmatpush.msra.mxu1 %v223_v7 }
  0xc2   :  { %248 = vmatpush.msra.mxu1 %v222_v10 }
  0xc4   :  { %249 = vmatpush.msra.mxu1 %v221_v12 }
  0xc6   :  { %250 = vmatpush.msra.mxu1 %v220_v15 }
  0xc8   :  { %251 = vmatpush.msra.mxu1 %v219_v16 }
  0xca   :  { %252 = vmatpush.msra.mxu1 %v218_v17 }
  0xcb   :  { %253 = vmatmul.f32.vlgmr.msra.gmra.mxu1 %v234_v19 }
 0x148   :  { %v254_v21 = vpop.f32.mrf.mxu1 }
 0x149   :  { %v255_v22 = vadd.f32 %v254_v21, %v236_v20 }
 0x14b   :  { %v257_v23 = vand.u32 2147483647, %v255_v22  ;;  %vm261_vm7 = vcmp.ge.f32.partialorder %v255_v22, 0.0 }
 0x14d   :  { %v258_v18 = vsub.f32 0.0, %v257_v23 }
 0x14f   :  { %v259_v24 = vmul.f32 1.442695, %v258_v18 }
 0x151   :  { %324 = vpow2.f32 %v259_v24 }
 0x157   :  { %v325_v25 = vpop.eup %324 }
 0x158   :  { %v262_v26 = vadd.f32 1.0, %v325_v25 }
 0x15a   :  { %326 = vrcp.f32 %v262_v26  ;;  %v274_v30 = vand.u32 2147483648, %v262_v26  ;;  %v272_v32 = vand.u32 2147483647, %v262_v26  ;;  %vm268_vm3 = vweird.f32 %v262_v26 }
 0x15c   :  { %v275_v34 = vor.u32 1.1754944e-38, %v274_v30  ;;  %vm273_vm5 = vcmp.eq.f32.partialorder %v272_v32, 8.507059e+37 }
 0x160   :  { %v327_v27 = vpop.eup %326 }
 0x161   :  { %v264_v28 = vmul.f32 %v327_v27, %v262_v26  ;;  %vm269_vm2 = vweird.f32 %v327_v27 }
 0x162   :  { %vm270_vm4 = vmor %vm268_vm3, %vm269_vm2 }
 0x163   :  { %v265_v29 = vsub.f32 1.0, %v264_v28 }
 0x165   :  { %v266_v31 = vmul.f32 %v327_v27, %v265_v29 }
 0x167   :  { %v267_v33 = vadd.f32 %v327_v27, %v266_v31 }
 0x169   :  { %v271_v35 = vsel %vm270_vm4, %v327_v27, %v267_v33 }
 0x16a   :  { %v276_v36 = vsel %vm273_vm5, %v275_v34, %v271_v35 }
 0x16b   :  { %v278_v37 = vmul.f32 %v325_v25, %v276_v36 }
 0x16d   :  { %v279_v38 = vsel %vm261_vm7, %v276_v36, %v278_v37 }
 0x16e   :  { %v282_v39 = vsub.f32 1.0, %v279_v38  ;;  %281 = vst.msk [vmem:[#allocation3] sm:$0x1] %vm280_vm6, %v279_v38 }
 0x170   :  { %283 = vst.msk [vmem:[#allocation3 + $0x1] sm:$0x1] %vm280_vm6, %v282_v39 }
 0x171   :  { %294 = dma.vmem_to_hbm [thread:$0]  %s290_s3, 32, %s292_s26, [#allocation4]  }
 0x172   :  { %352 = dma.done.wait [#allocation4], 32  }
 0x173   :  { %353 = vsyncadd [#allocation4], 4294967264 }
 0x174   :  { %299 = vsyncpa [#allocation4], 1 }

</bundles_post_ra>
